<compile_context>
chip_gen: v7x
topology: tpu7x:2x2x1
jax: 0.10.0
libtpu: 0.0.40
codegen_flags: <defaults>
</compile_context>

<pallas_src>
import functools

import jax
import jax.numpy as jnp
from jax.experimental import pallas as pl
from jax.experimental.pallas import tpu as pltpu

# Raise the scoped VMEM limit (defaults: 16 MiB v5e, 32 MiB v6e/v7x); stays
# comfortably under the 64 MiB physical VMEM of v7x.
_VMEM_LIMIT = 48 * 1024 * 1024


def _pick_tile(n, target):
    """Largest tile <= target that divides n and is sublane (8) aligned, else n."""
    if n <= target:
        return n
    t = (target // 8) * 8
    while t >= 8:
        if n % t == 0:
            return t
        t -= 8
    return n


# ---------------------------------------------------------------------------
# Kernels 1 & 3: y = x @ W + b  (W already transposed to (in, out) in wrapper)
# ---------------------------------------------------------------------------
def _linear_kernel(x_ref, w_ref, b_ref, o_ref):
    y = jnp.dot(x_ref[...], w_ref[...], preferred_element_type=jnp.float32)
    o_ref[...] = (y + b_ref[...]).astype(o_ref.dtype)


def _linear(x2d, w, b, out_dtype, *, row_tile=256):
    rows, cin = x2d.shape
    cout = w.shape[1]
    tm = _pick_tile(rows, row_tile)
    return pl.pallas_call(
        _linear_kernel,
        out_shape=jax.ShapeDtypeStruct((rows, cout), out_dtype),
        grid_spec=pltpu.PrefetchScalarGridSpec(
            num_scalar_prefetch=0,
            grid=(rows // tm,),
            in_specs=[
                pl.BlockSpec((tm, cin), lambda i: (i, 0)),
                # Constant operands: index map never changes -> single buffer
                # (no re-DMA, half the VMEM footprint for the weights).
                pl.BlockSpec((cin, cout), lambda i: (0, 0),
                             pipeline_mode=pl.Buffered(1)),
                pl.BlockSpec((1, cout), lambda i: (0, 0),
                             pipeline_mode=pl.Buffered(1)),
            ],
            out_specs=pl.BlockSpec((tm, cout), lambda i: (i, 0)),
        ),
        compiler_params=pltpu.CompilerParams(
            dimension_semantics=("parallel",),
            vmem_limit_bytes=_VMEM_LIMIT),
    )(x2d, w, b)


# ---------------------------------------------------------------------------
# Kernel 2: flash attention (online softmax) over head-major (B*H, N, D)
# ---------------------------------------------------------------------------
def _flash_kernel(q_ref, k_ref, v_ref, o_ref, m_sc, l_sc, acc_sc):
    ki = pl.program_id(2)

    @pl.when(ki == 0)
    def _init():
        m_sc[...] = jnp.full(m_sc.shape, -jnp.inf, dtype=m_sc.dtype)
        l_sc[...] = jnp.zeros(l_sc.shape, dtype=l_sc.dtype)
        acc_sc[...] = jnp.zeros(acc_sc.shape, dtype=acc_sc.dtype)

    # Scale is already folded into q (via the QKV weight); contraction over the
    # last dims -> no transposed K tile is materialized.
    s = jnp.einsum('bqd,bkd->bqk', q_ref[...], k_ref[...],
                   preferred_element_type=jnp.float32)          # (1, tq, tkv) f32

    m_prev = m_sc[...]
    m_new = jnp.maximum(m_prev, s.max(axis=-1, keepdims=True))
    alpha = jnp.exp(m_prev - m_new)
    p = jnp.exp(s - m_new)                                      # f32 softmax math
    l_sc[...] = alpha * l_sc[...] + p.sum(axis=-1, keepdims=True)
    acc_sc[...] = alpha * acc_sc[...] + jnp.einsum(
        'bqk,bkd->bqd', p.astype(v_ref.dtype), v_ref[...],
        preferred_element_type=jnp.float32)
    m_sc[...] = m_new

    @pl.when(ki == pl.num_programs(2) - 1)
    def _finalize():
        inv_l = pl.reciprocal(l_sc[...], approx=True)           # EUP slot, ~free
        o_ref[...] = (acc_sc[...] * inv_l).astype(o_ref.dtype)


def _flash_attention(q, k, v, out_dtype, *, q_tile=256, kv_tile=512):
    bh, n, d = q.shape
    tq = _pick_tile(n, q_tile)
    tkv = _pick_tile(n, kv_tile)
    return pl.pallas_call(
        _flash_kernel,
        out_shape=jax.ShapeDtypeStruct((bh, n, d), out_dtype),
        grid_spec=pltpu.PrefetchScalarGridSpec(
            num_scalar_prefetch=0,
            grid=(bh, n // tq, n // tkv),            # kv (reduction) axis last
            in_specs=[
                pl.BlockSpec((1, tq, d), lambda b, qi, ki: (b, qi, 0)),
                pl.BlockSpec((1, tkv, d), lambda b, qi, ki: (b, ki, 0)),
                pl.BlockSpec((1, tkv, d), lambda b, qi, ki: (b, ki, 0)),
            ],
            out_specs=pl.BlockSpec((1, tq, d), lambda b, qi, ki: (b, qi, 0)),
            scratch_shapes=[
                pltpu.VMEM((1, tq, 1), jnp.float32),   # running max
                pltpu.VMEM((1, tq, 1), jnp.float32),   # running sum
                pltpu.VMEM((1, tq, d), jnp.float32),   # f32 output accumulator
            ],
        ),
        compiler_params=pltpu.CompilerParams(
            dimension_semantics=("parallel", "parallel", "arbitrary"),
            vmem_limit_bytes=_VMEM_LIMIT),
    )(q, k, v)


# ---------------------------------------------------------------------------
# Full SelfAttention forward
# ---------------------------------------------------------------------------
def self_attention(x, w_qkv, w_proj, b_proj, *, num_heads, qk_scale=None,
                   mxu_dtype=None, q_tile=256, kv_tile=512):
    """x: (B, N, C); w_qkv: (3C, C); w_proj: (C, C); b_proj: (C,).

    mxu_dtype: optional dtype (e.g. jnp.bfloat16) for the MXU operands on
    v6e/v7x; softmax statistics and accumulation stay f32. None -> x.dtype.
    """
    B, N, C = x.shape
    assert C % num_heads == 0
    D = C // num_heads
    scale = qk_scale if qk_scale is not None else D ** (-0.5)
    cdt = mxu_dtype if mxu_dtype is not None else x.dtype

    # Weight prep (wrapper-side, once): transpose to (in, out) and fold the
    # softmax scale into the Q columns so no (N, N) score multiply is needed.
    wqkv_t = jnp.asarray(w_qkv, jnp.float32).T                        # (C, 3C)
    col_scale = jnp.concatenate(
        [jnp.full((C,), scale, jnp.float32), jnp.ones((2 * C,), jnp.float32)])
    wqkv_t = (wqkv_t * col_scale[None, :]).astype(cdt)
    wproj_t = jnp.asarray(w_proj, jnp.float32).T.astype(cdt)          # (C, C)
    b_zero = jnp.zeros((1, 3 * C), jnp.float32)                       # qkv_bias=False
    b_proj2d = jnp.asarray(b_proj, jnp.float32).reshape(1, C)

    # 1) fused QKV projection.
    qkv = _linear(x.reshape(B * N, C).astype(cdt), wqkv_t, b_zero, cdt)  # (B*N, 3C)

    # Layout plumbing: token-major -> head-major (pure XLA transpose).
    qkv = qkv.reshape(B, N, 3, num_heads, D)
    q = qkv[:, :, 0].transpose(0, 2, 1, 3).reshape(B * num_heads, N, D)
    k = qkv[:, :, 1].transpose(0, 2, 1, 3).reshape(B * num_heads, N, D)
    v = qkv[:, :, 2].transpose(0, 2, 1, 3).reshape(B * num_heads, N, D)

    # 2) flash attention (online softmax; attn_drop has rate 0.0 -> identity).
    ctx = _flash_attention(q, k, v, cdt, q_tile=q_tile, kv_tile=kv_tile)  # (B*H, N, D)

    # Layout plumbing back: head-major -> token-major.
    ctx = ctx.reshape(B, num_heads, N, D).transpose(0, 2, 1, 3).reshape(B * N, C)

    # 3) output projection + bias (proj_drop has rate 0.0 -> identity).
    # TODO(synk): non-zero-rate training dropout not implemented (module default is 0.0).
    out = _linear(ctx, wproj_t, b_proj2d, x.dtype)
    return out.reshape(B, N, C)


def self_attention_ref(x, w_qkv, w_proj, b_proj, *, num_heads, qk_scale=None):
    """Pure-JAX reference mirroring the PyTorch forward exactly."""
    B, N, C = x.shape
    D = C // num_heads
    scale = qk_scale if qk_scale is not None else D ** (-0.5)
    qkv = x @ w_qkv.T
    qkv = qkv.reshape(B, N, 3, num_heads, D).transpose(2, 0, 3, 1, 4)
    q, k, v = qkv[0], qkv[1], qkv[2]
    attn = (q @ jnp.swapaxes(k, -2, -1)) * scale
    attn = jax.nn.softmax(attn, axis=-1)
    out = (attn @ v).transpose(0, 2, 1, 3).reshape(B, N, C)
    return out @ w_proj.T + b_proj


if __name__ == "__main__":
    B, N, C, HEADS = 2, 16, 32, 8

    key = jax.random.PRNGKey(0)
    kx, kq, kp, kb = jax.random.split(key, 4)
    x = jax.random.normal(kx, (B, N, C), dtype=jnp.float32)
    w_qkv = jax.random.normal(kq, (3 * C, C), dtype=jnp.float32) * (C ** -0.5)
    w_proj = jax.random.normal(kp, (C, C), dtype=jnp.float32) * (C ** -0.5)
    b_proj = jax.random.normal(kb, (C,), dtype=jnp.float32) * 0.01

    ref = self_attention_ref(x, w_qkv, w_proj, b_proj, num_heads=HEADS)

    # f32 MXU path (matches reference up to the approx softmax reciprocal).
    fwd_f32 = jax.jit(functools.partial(self_attention, num_heads=HEADS))
    out_f32 = jax.block_until_ready(fwd_f32(x, w_qkv, w_proj, b_proj))
    assert out_f32.shape == (B, N, C)
    assert jnp.allclose(out_f32, ref, atol=5e-3, rtol=5e-3), (
        float(jnp.max(jnp.abs(out_f32 - ref))))

    # bf16 MXU fast path (v6e/v7x): bf16 operands, f32 softmax/accumulation.
    fwd_bf16 = jax.jit(functools.partial(self_attention, num_heads=HEADS,
                                         mxu_dtype=jnp.bfloat16))
    out_bf16 = jax.block_until_ready(fwd_bf16(x, w_qkv, w_proj, b_proj))
    assert jnp.allclose(out_bf16, ref, atol=1e-1, rtol=1e-1), (
        float(jnp.max(jnp.abs(out_bf16 - ref))))

    print("KERNEL_OK")
</pallas_src>

<mosaic_0001>
module attributes {stable_mosaic.version = 11 : i64} {
  func.func @_linear_kernel(%arg0: i32, %arg1: memref<32x32xf32, #tpu.memory_space<vmem>>, %arg2: memref<32x96xf32, #tpu.memory_space<vmem>>, %arg3: memref<1x96xf32, #tpu.memory_space<vmem>>, %arg4: memref<32x96xf32, #tpu.memory_space<vmem>>) attributes {dimension_semantics = [#tpu.dimension_semantics<parallel>], iteration_bounds = array<i64: 1>, scalar_prefetch = 0 : i64, scratch_operands = 0 : i64, tpu.core_type = #tpu.core_type<tc>, window_params = [{transform_indices = @transform_0, window_bounds = array<i64: 32, 32>}, {pipeline_mode = #tpu.pipeline_mode<synchronous>, transform_indices = @transform_1, window_bounds = array<i64: 32, 96>}, {pipeline_mode = #tpu.pipeline_mode<synchronous>, transform_indices = @transform_2, window_bounds = array<i64: 1, 96>}, {transform_indices = @transform_3, window_bounds = array<i64: 32, 96>}]} {
    %c0 = arith.constant 0 : index
    %c0_0 = arith.constant 0 : index
    %0 = vector.load %arg1[%c0, %c0_0] : memref<32x32xf32, #tpu.memory_space<vmem>>, vector<32x32xf32>
    %c0_1 = arith.constant 0 : index
    %c0_2 = arith.constant 0 : index
    %1 = vector.load %arg2[%c0_1, %c0_2] : memref<32x96xf32, #tpu.memory_space<vmem>>, vector<32x96xf32>
    %cst = arith.constant dense<0.000000e+00> : vector<32x96xf32>
    %2 = tpu.matmul %0, %1, %cst {dimension_numbers = #tpu.dot_dimension_numbers<[1], [0], [0], [1], [0, 0, 1, 1], [], []>} : vector<32x32xf32>, vector<32x96xf32>, vector<32x96xf32> -> vector<32x96xf32>
    %c0_3 = arith.constant 0 : index
    %c0_4 = arith.constant 0 : index
    %3 = vector.load %arg3[%c0_3, %c0_4] : memref<1x96xf32, #tpu.memory_space<vmem>>, vector<1x96xf32>
    %4 = vector.broadcast %3 : vector<1x96xf32> to vector<32x96xf32>
    %5 = arith.addf %2, %4 : vector<32x96xf32>
    %c0_5 = arith.constant 0 : index
    %c0_6 = arith.constant 0 : index
    %6 = vector.load %arg4[%c0_5, %c0_6] : memref<32x96xf32, #tpu.memory_space<vmem>>, vector<32x96xf32>
    tpu.vector_store %arg4[%c0_5, %c0_6], %5 {strides = array<i32>} : memref<32x96xf32, #tpu.memory_space<vmem>>, vector<32x96xf32>,
    return
  }
  func.func @transform_0(%arg0: i32) -> (i32, i32) {
    %c0_i32 = arith.constant 0 : i32
    %c0_i32_0 = arith.constant 0 : i32
    return %arg0, %c0_i32 : i32, i32
  }
  func.func @transform_1(%arg0: i32) -> (i32, i32) {
    %c0_i32 = arith.constant 0 : i32
    %c0_i32_0 = arith.constant 0 : i32
    %c0_i32_1 = arith.constant 0 : i32
    return %c0_i32, %c0_i32_0 : i32, i32
  }
  func.func @transform_2(%arg0: i32) -> (i32, i32) {
    %c0_i32 = arith.constant 0 : i32
    %c0_i32_0 = arith.constant 0 : i32
    %c0_i32_1 = arith.constant 0 : i32
    return %c0_i32, %c0_i32_0 : i32, i32
  }
  func.func @transform_3(%arg0: i32) -> (i32, i32) {
    %c0_i32 = arith.constant 0 : i32
    %c0_i32_0 = arith.constant 0 : i32
    return %arg0, %c0_i32 : i32, i32
  }
}

module attributes {stable_mosaic.version = 11 : i64} {
  func.func @_flash_kernel(%arg0: i32, %arg1: i32, %arg2: i32, %arg3: memref<1x16x4xf32, #tpu.memory_space<vmem>>, %arg4: memref<1x16x4xf32, #tpu.memory_space<vmem>>, %arg5: memref<1x16x4xf32, #tpu.memory_space<vmem>>, %arg6: memref<1x16x4xf32, #tpu.memory_space<vmem>>, %arg7: memref<1x16x1xf32, #tpu.memory_space<vmem>>, %arg8: memref<1x16x1xf32, #tpu.memory_space<vmem>>, %arg9: memref<1x16x4xf32, #tpu.memory_space<vmem>>) attributes {dimension_semantics = [#tpu.dimension_semantics<parallel>, #tpu.dimension_semantics<parallel>, #tpu.dimension_semantics<arbitrary>], iteration_bounds = array<i64: 16, 1, 1>, scalar_prefetch = 0 : i64, scratch_operands = 3 : i64, tpu.core_type = #tpu.core_type<tc>, window_params = [{transform_indices = @transform_0, window_bounds = array<i64: 1, 16, 4>}, {transform_indices = @transform_1, window_bounds = array<i64: 1, 16, 4>}, {transform_indices = @transform_2, window_bounds = array<i64: 1, 16, 4>}, {transform_indices = @transform_3, window_bounds = array<i64: 1, 16, 4>}]} {
    %c0_i32 = arith.constant 0 : i32
    %0 = arith.cmpi eq, %arg2, %c0_i32 : i32
    %1 = arith.extui %0 : i1 to i32
    %c0_i32_0 = arith.constant 0 : i32
    %2 = arith.cmpi ne, %1, %c0_i32_0 : i32
    scf.if %2 {
      %cst_32 = arith.constant 0xFF800000 : f32
      %32 = vector.broadcast %cst_32 : f32 to vector<1x16x1xf32>
      %c0_33 = arith.constant 0 : index
      %c0_34 = arith.constant 0 : index
      %c0_35 = arith.constant 0 : index
      %33 = vector.load %arg7[%c0_33, %c0_34, %c0_35] : memref<1x16x1xf32, #tpu.memory_space<vmem>>, vector<1x16x1xf32>
      tpu.vector_store %arg7[%c0_33, %c0_34, %c0_35], %32 {strides = array<i32>} : memref<1x16x1xf32, #tpu.memory_space<vmem>>, vector<1x16x1xf32>,
      %cst_36 = arith.constant 0.000000e+00 : f32
      %34 = vector.broadcast %cst_36 : f32 to vector<1x16x1xf32>
      %c0_37 = arith.constant 0 : index
      %c0_38 = arith.constant 0 : index
      %c0_39 = arith.constant 0 : index
      %35 = vector.load %arg8[%c0_37, %c0_38, %c0_39] : memref<1x16x1xf32, #tpu.memory_space<vmem>>, vector<1x16x1xf32>
      tpu.vector_store %arg8[%c0_37, %c0_38, %c0_39], %34 {strides = array<i32>} : memref<1x16x1xf32, #tpu.memory_space<vmem>>, vector<1x16x1xf32>,
      %cst_40 = arith.constant 0.000000e+00 : f32
      %36 = vector.broadcast %cst_40 : f32 to vector<1x16x4xf32>
      %c0_41 = arith.constant 0 : index
      %c0_42 = arith.constant 0 : index
      %c0_43 = arith.constant 0 : index
      %37 = vector.load %arg9[%c0_41, %c0_42, %c0_43] : memref<1x16x4xf32, #tpu.memory_space<vmem>>, vector<1x16x4xf32>
      tpu.vector_store %arg9[%c0_41, %c0_42, %c0_43], %36 {strides = array<i32>} : memref<1x16x4xf32, #tpu.memory_space<vmem>>, vector<1x16x4xf32>,
    } else {
    }
    %c0 = arith.constant 0 : index
    %c0_1 = arith.constant 0 : index
    %c0_2 = arith.constant 0 : index
    %3 = vector.load %arg3[%c0, %c0_1, %c0_2] : memref<1x16x4xf32, #tpu.memory_space<vmem>>, vector<1x16x4xf32>
    %c0_3 = arith.constant 0 : index
    %c0_4 = arith.constant 0 : index
    %c0_5 = arith.constant 0 : index
    %4 = vector.load %arg4[%c0_3, %c0_4, %c0_5] : memref<1x16x4xf32, #tpu.memory_space<vmem>>, vector<1x16x4xf32>
    "tpu.trace_start"() <{level = 10 : i32, message = "bqd,bkd->bqk"}> : () -> ()
    %cst = arith.constant dense<0.000000e+00> : vector<1x16x16xf32>
    %5 = tpu.matmul %3, %4, %cst {dimension_numbers = #tpu.dot_dimension_numbers<[2], [2], [1], [1], [0, 0, 0, 1, 1, 1], [0], [0]>} : vector<1x16x4xf32>, vector<1x16x4xf32>, vector<1x16x16xf32> -> vector<1x16x16xf32>
    "tpu.trace_stop"() : () -> ()
    %c0_6 = arith.constant 0 : index
    %c0_7 = arith.constant 0 : index
    %c0_8 = arith.constant 0 : index
    %6 = vector.load %arg7[%c0_6, %c0_7, %c0_8] : memref<1x16x1xf32, #tpu.memory_space<vmem>>, vector<1x16x1xf32>
    %cst_9 = arith.constant dense<0xFF800000> : vector<1x16xf32>
    %7 = vector.multi_reduction <maximumf>, %5, %cst_9 [2] : vector<1x16x16xf32> to vector<1x16xf32>
    %8 = vector.shape_cast %7 : vector<1x16xf32> to vector<1x16x1xf32>
    %9 = arith.maximumf %6, %8 : vector<1x16x1xf32>
    %10 = arith.subf %6, %9 : vector<1x16x1xf32>
    %11 = math.exp %10 : vector<1x16x1xf32>
    %12 = vector.broadcast %9 : vector<1x16x1xf32> to vector<1x16x16xf32>
    %13 = arith.subf %5, %12 : vector<1x16x16xf32>
    %14 = math.exp %13 : vector<1x16x16xf32>
    %c0_10 = arith.constant 0 : index
    %c0_11 = arith.constant 0 : index
    %c0_12 = arith.constant 0 : index
    %15 = vector.load %arg8[%c0_10, %c0_11, %c0_12] : memref<1x16x1xf32, #tpu.memory_space<vmem>>, vector<1x16x1xf32>
    %16 = arith.mulf %11, %15 : vector<1x16x1xf32>
    %cst_13 = arith.constant dense<0.000000e+00> : vector<1x16xf32>
    %17 = vector.multi_reduction <add>, %14, %cst_13 [2] : vector<1x16x16xf32> to vector<1x16xf32>
    %18 = vector.shape_cast %17 : vector<1x16xf32> to vector<1x16x1xf32>
    %19 = arith.addf %16, %18 : vector<1x16x1xf32>
    %c0_14 = arith.constant 0 : index
    %c0_15 = arith.constant 0 : index
    %c0_16 = arith.constant 0 : index
    %20 = vector.load %arg8[%c0_14, %c0_15, %c0_16] : memref<1x16x1xf32, #tpu.memory_space<vmem>>, vector<1x16x1xf32>
    tpu.vector_store %arg8[%c0_14, %c0_15, %c0_16], %19 {strides = array<i32>} : memref<1x16x1xf32, #tpu.memory_space<vmem>>, vector<1x16x1xf32>,
    %c0_17 = arith.constant 0 : index
    %c0_18 = arith.constant 0 : index
    %c0_19 = arith.constant 0 : index
    %21 = vector.load %arg9[%c0_17, %c0_18, %c0_19] : memref<1x16x4xf32, #tpu.memory_space<vmem>>, vector<1x16x4xf32>
    %22 = vector.broadcast %11 : vector<1x16x1xf32> to vector<1x16x4xf32>
    %23 = arith.mulf %22, %21 : vector<1x16x4xf32>
    %c0_20 = arith.constant 0 : index
    %c0_21 = arith.constant 0 : index
    %c0_22 = arith.constant 0 : index
    %24 = vector.load %arg5[%c0_20, %c0_21, %c0_22] : memref<1x16x4xf32, #tpu.memory_space<vmem>>, vector<1x16x4xf32>
    "tpu.trace_start"() <{level = 10 : i32, message = "bqk,bkd->bqd"}> : () -> ()
    %cst_23 = arith.constant dense<0.000000e+00> : vector<1x16x4xf32>
    %25 = tpu.matmul %14, %24, %cst_23 {dimension_numbers = #tpu.dot_dimension_numbers<[2], [1], [1], [2], [0, 0, 0, 1, 1, 2], [0], [0]>} : vector<1x16x16xf32>, vector<1x16x4xf32>, vector<1x16x4xf32> -> vector<1x16x4xf32>
    "tpu.trace_stop"() : () -> ()
    %26 = arith.addf %23, %25 : vector<1x16x4xf32>
    %c0_24 = arith.constant 0 : index
    %c0_25 = arith.constant 0 : index
    %c0_26 = arith.constant 0 : index
    %27 = vector.load %arg9[%c0_24, %c0_25, %c0_26] : memref<1x16x4xf32, #tpu.memory_space<vmem>>, vector<1x16x4xf32>
    tpu.vector_store %arg9[%c0_24, %c0_25, %c0_26], %26 {strides = array<i32>} : memref<1x16x4xf32, #tpu.memory_space<vmem>>, vector<1x16x4xf32>,
    %c0_27 = arith.constant 0 : index
    %c0_28 = arith.constant 0 : index
    %c0_29 = arith.constant 0 : index
    %28 = vector.load %arg7[%c0_27, %c0_28, %c0_29] : memref<1x16x1xf32, #tpu.memory_space<vmem>>, vector<1x16x1xf32>
    tpu.vector_store %arg7[%c0_27, %c0_28, %c0_29], %9 {strides = array<i32>} : memref<1x16x1xf32, #tpu.memory_space<vmem>>, vector<1x16x1xf32>,
    %c0_i32_30 = arith.constant 0 : i32
    %29 = arith.cmpi eq, %arg2, %c0_i32_30 : i32
    %30 = arith.extui %29 : i1 to i32
    %c0_i32_31 = arith.constant 0 : i32
    %31 = arith.cmpi ne, %30, %c0_i32_31 : i32
    scf.if %31 {
      %c0_32 = arith.constant 0 : index
      %c0_33 = arith.constant 0 : index
      %c0_34 = arith.constant 0 : index
      %32 = vector.load %arg8[%c0_32, %c0_33, %c0_34] : memref<1x16x1xf32, #tpu.memory_space<vmem>>, vector<1x16x1xf32>
      %33 = tpu.reciprocal %32 {approx = true} : vector<1x16x1xf32> -> vector<1x16x1xf32>
      %c0_35 = arith.constant 0 : index
      %c0_36 = arith.constant 0 : index
      %c0_37 = arith.constant 0 : index
      %34 = vector.load %arg9[%c0_35, %c0_36, %c0_37] : memref<1x16x4xf32, #tpu.memory_space<vmem>>, vector<1x16x4xf32>
      %35 = vector.broadcast %33 : vector<1x16x1xf32> to vector<1x16x4xf32>
      %36 = arith.mulf %34, %35 : vector<1x16x4xf32>
      %c0_38 = arith.constant 0 : index
      %c0_39 = arith.constant 0 : index
      %c0_40 = arith.constant 0 : index
      %37 = vector.load %arg6[%c0_38, %c0_39, %c0_40] : memref<1x16x4xf32, #tpu.memory_space<vmem>>, vector<1x16x4xf32>
      tpu.vector_store %arg6[%c0_38, %c0_39, %c0_40], %36 {strides = array<i32>} : memref<1x16x4xf32, #tpu.memory_space<vmem>>, vector<1x16x4xf32>,
    } else {
    }
    return
  }
  func.func @transform_0(%arg0: i32, %arg1: i32, %arg2: i32) -> (i32, i32, i32) {
    %c0_i32 = arith.constant 0 : i32
    %c0_i32_0 = arith.constant 0 : i32
    return %arg0, %arg1, %c0_i32 : i32, i32, i32
  }
  func.func @transform_1(%arg0: i32, %arg1: i32, %arg2: i32) -> (i32, i32, i32) {
    %c0_i32 = arith.constant 0 : i32
    %c0_i32_0 = arith.constant 0 : i32
    return %arg0, %arg2, %c0_i32 : i32, i32, i32
  }
  func.func @transform_2(%arg0: i32, %arg1: i32, %arg2: i32) -> (i32, i32, i32) {
    %c0_i32 = arith.constant 0 : i32
    %c0_i32_0 = arith.constant 0 : i32
    return %arg0, %arg2, %c0_i32 : i32, i32, i32
  }
  func.func @transform_3(%arg0: i32, %arg1: i32, %arg2: i32) -> (i32, i32, i32) {
    %c0_i32 = arith.constant 0 : i32
    %c0_i32_0 = arith.constant 0 : i32
    return %arg0, %arg1, %c0_i32 : i32, i32, i32
  }
}

module attributes {stable_mosaic.version = 11 : i64} {
  func.func @_linear_kernel(%arg0: i32, %arg1: memref<32x32xf32, #tpu.memory_space<vmem>>, %arg2: memref<32x32xf32, #tpu.memory_space<vmem>>, %arg3: memref<1x32xf32, #tpu.memory_space<vmem>>, %arg4: memref<32x32xf32, #tpu.memory_space<vmem>>) attributes {dimension_semantics = [#tpu.dimension_semantics<parallel>], iteration_bounds = array<i64: 1>, scalar_prefetch = 0 : i64, scratch_operands = 0 : i64, tpu.core_type = #tpu.core_type<tc>, window_params = [{transform_indices = @transform_0, window_bounds = array<i64: 32, 32>}, {pipeline_mode = #tpu.pipeline_mode<synchronous>, transform_indices = @transform_1, window_bounds = array<i64: 32, 32>}, {pipeline_mode = #tpu.pipeline_mode<synchronous>, transform_indices = @transform_2, window_bounds = array<i64: 1, 32>}, {transform_indices = @transform_3, window_bounds = array<i64: 32, 32>}]} {
    %c0 = arith.constant 0 : index
    %c0_0 = arith.constant 0 : index
    %0 = vector.load %arg1[%c0, %c0_0] : memref<32x32xf32, #tpu.memory_space<vmem>>, vector<32x32xf32>
    %c0_1 = arith.constant 0 : index
    %c0_2 = arith.constant 0 : index
    %1 = vector.load %arg2[%c0_1, %c0_2] : memref<32x32xf32, #tpu.memory_space<vmem>>, vector<32x32xf32>
    %cst = arith.constant dense<0.000000e+00> : vector<32x32xf32>
    %2 = tpu.matmul %0, %1, %cst {dimension_numbers = #tpu.dot_dimension_numbers<[1], [0], [0], [1], [0, 0, 1, 1], [], []>} : vector<32x32xf32>, vector<32x32xf32>, vector<32x32xf32> -> vector<32x32xf32>
    %c0_3 = arith.constant 0 : index
    %c0_4 = arith.constant 0 : index
    %3 = vector.load %arg3[%c0_3, %c0_4] : memref<1x32xf32, #tpu.memory_space<vmem>>, vector<1x32xf32>
    %4 = vector.broadcast %3 : vector<1x32xf32> to vector<32x32xf32>
    %5 = arith.addf %2, %4 : vector<32x32xf32>
    %c0_5 = arith.constant 0 : index
    %c0_6 = arith.constant 0 : index
    %6 = vector.load %arg4[%c0_5, %c0_6] : memref<32x32xf32, #tpu.memory_space<vmem>>, vector<32x32xf32>
    tpu.vector_store %arg4[%c0_5, %c0_6], %5 {strides = array<i32>} : memref<32x32xf32, #tpu.memory_space<vmem>>, vector<32x32xf32>,
    return
  }
  func.func @transform_0(%arg0: i32) -> (i32, i32) {
    %c0_i32 = arith.constant 0 : i32
    %c0_i32_0 = arith.constant 0 : i32
    return %arg0, %c0_i32 : i32, i32
  }
  func.func @transform_1(%arg0: i32) -> (i32, i32) {
    %c0_i32 = arith.constant 0 : i32
    %c0_i32_0 = arith.constant 0 : i32
    %c0_i32_1 = arith.constant 0 : i32
    return %c0_i32, %c0_i32_0 : i32, i32
  }
  func.func @transform_2(%arg0: i32) -> (i32, i32) {
    %c0_i32 = arith.constant 0 : i32
    %c0_i32_0 = arith.constant 0 : i32
    %c0_i32_1 = arith.constant 0 : i32
    return %c0_i32, %c0_i32_0 : i32, i32
  }
  func.func @transform_3(%arg0: i32) -> (i32, i32) {
    %c0_i32 = arith.constant 0 : i32
    %c0_i32_0 = arith.constant 0 : i32
    return %arg0, %c0_i32 : i32, i32
  }
}

</mosaic_0001>

<bundles_post_ra>
// kernel: self_attention.3
= control target key start
LH: loop header
LB: loop body
LE: loop exit
PB: predicated region body
PF: predicated region fallthrough
CT: control target
= control target key end

     0   :  { %vm29_vm0 = vcmask 261120   ;;  %vm127_vm1 = vcmask 785408   ;;  %s238_s1 = inlined_call_operand.vmem [shape: f32[32,96], index: 1, kind: input, shape index: {}]   ;;  %s239_s0 = inlined_call_operand.vmem [shape: f32[32,32], index: 0, kind: input, shape index: {}]   ;;  %s240_s2 = inlined_call_operand.vmem [shape: f32[1,96], index: 2, kind: input, shape index: {}]   ;;  %s241_s3 = inlined_call_operand.vmem [shape: f32[32,96], index: 3, kind: output, shape index: {}]  }
   0x1   :  { %v18_v0 = vld [vmem:[%s238_s1] sm:$0xff]  ;;  %v19_v1 = vld [vmem:[%s238_s1 + $0x8] sm:$0xff]  ;;  %v20_v2 = vld [vmem:[%s238_s1 + $0x10] sm:$0xff] }
   0x2   :  { %v163_v3 = vpack.c.bf16 %v19_v1, %v18_v0  ;;  %v21_v4 = vld [vmem:[%s238_s1 + $0x18] sm:$0xff]  ;;  %v14_v5 = vld [vmem:[%s239_s0] sm:$0xff]  ;;  %v16_v6 = vld [vmem:[%s239_s0 + $0x10] sm:$0xff] }
   0x3   :  { %v167_v7 = vpack.c.bf16 %v21_v4, %v20_v2  ;;  %157 = vmatprep.mubr.msk.f32.mxu0 %vm29_vm0, %v14_v5  ;;  %160 = vmatprep.mubr.msk.f32.mxu1 %vm29_vm0, %v16_v6  ;;  %v15_v8 = vld [vmem:[%s239_s0 + $0x8] sm:$0xff]  ;;  %v17_v9 = vld [vmem:[%s239_s0 + $0x18] sm:$0xff]  ;;  %v136_v10 = vld [vmem:[%s240_s2] ss:$0 sm:$0xff] }
   0x4   :  { %164 = vmatprep.subr.bf16.mxu0 %v163_v3  ;;  %171 = vmatprep.subr.bf16.mxu1 %v163_v3 }
   0x5   :  { %166 = vmatpush3.bf16.msra.mxu0 %v163_v3  ;;  %173 = vmatpush3.bf16.msra.mxu1 %v163_v3 }
   0x6   :  { %168 = vmatprep.subr.bf16.mxu0 %v167_v7  ;;  %172 = vmatprep.subr.bf16.mxu1 %v167_v7 }
   0x9   :  { %170 = vmatpush3.bf16.msra.mxu0 %v167_v7  ;;  %174 = vmatpush3.bf16.msra.mxu1 %v167_v7 }
   0xc   :  { %158 = vmatmul.mubr.msk.f32.vlgmr.msra.gmra.mrb[0].mxu0 %vm29_vm0, %v15_v8  ;;  %161 = vmatmul.mubr.msk.f32.vlgmr.msra.gmra.mrb[0].mxu1 %vm29_vm0, %v17_v9 }
  0xdf   :  { %v159_v11 = vpop.f32.mrb[0].mxu0  ;;  %v162_v12 = vpop.f32.mrb[0].mxu1 }
  0xe0   :  { %v114_v13 = vadd.f32 %v159_v11, %v136_v10  ;;  %v124_v14 = vadd.f32 %v162_v12, %v136_v10  ;;  %v108_v15 = vpop.f32.mrb[1].mxu0  ;;  %v118_v16 = vpop.f32.mrb[1].mxu1 }
  0xe1   :  { %v109_v17 = vadd.f32 %v136_v10, %v108_v15  ;;  %v119_v18 = vadd.f32 %v136_v10, %v118_v16 }
  0xe2   :  { %129 = vst.msk [vmem:[%s241_s3 + $0x8] sm:$0xff] %vm127_vm1, %v114_v13  ;;  %131 = vst.msk [vmem:[%s241_s3 + $0x18] sm:$0xff] %vm127_vm1, %v124_v14 }
  0xe3   :  { %128 = vst.msk [vmem:[%s241_s3] sm:$0xff] %vm127_vm1, %v109_v17  ;;  %130 = vst.msk [vmem:[%s241_s3 + $0x10] sm:$0xff] %vm127_vm1, %v119_v18 }

// kernel: self_attention.4
= control target key start
LH: loop header
LB: loop body
LE: loop exit
PB: predicated region body
PF: predicated region fallthrough
CT: control target
= control target key end

     0   :  { %s838_s12 = smov 0   ;;  %s840_s13 = smov 0   ;;  %s907_s0 = inlined_call_operand.vmem [shape: f32[16,16,4], index: 0, kind: input, shape index: {}]   ;;  %s908_s1 = inlined_call_operand.vmem [shape: f32[16,16,4], index: 1, kind: input, shape index: {}]   ;;  %s909_s2 = inlined_call_operand.vmem [shape: f32[16,16,4], index: 2, kind: input, shape index: {}]   ;;  %s910_s3 = inlined_call_operand.vmem [shape: f32[16,16,4], index: 3, kind: output, shape index: {}]  }
   0x1   :  { %s842_s14 = smov 0  }
   0x2 LB: > { %s32_s15 = sadd.s32 1, %s809_s13  ;;  %p697_p0 = scmp.ge.s32.totalorder %s813_s14, 1  ;;  %s813_s14 = sphi %s842_s14, %s13_s14   ;;  %s809_s13 = sphi %s840_s13, %s912_s13   ;;  %s805_s12 = sphi %s838_s12, %s911_s12  }
   0x3   : > { %p34_p1 = scmp.ge.s32.totalorder %s32_s15, 16  ;;  %p199_p2 = scmp.lt.s32.totalorder %s813_s14, 17 }
   0x5   : > { %s914_s15 = smov (%p34_p1, %s32_s15), 0  ;;  %p200_p3 = pnand %p697_p0, %p199_p2 }
   0x6   : > { %p250_p4 = scmp.lt.s32.totalorder (!%p200_p3), %s805_s12, 15  ;;  %vm298_vm0 = vcmask (!%p200_p3), 31744   ;;  %vm293_vm2 = vcmask (!%p200_p3), 7168   ;;  %v815_v5 = vmov (!%p200_p3), -inf   ;;  %vm395_vm3 = vcmask (!%p200_p3), 130048  }
   0x7   : > { %203 = sbr.rel (%p200_p3) target bundleno = 828 (0x33c), region = 32  ;;  %vm741_vm1 = vmpackc.low (!%p200_p3), %vm298_vm0, %vm298_vm0  ;;  %294 = vst.msk [vmem:[#allocation2] sm:$0xff] (!%p200_p3), %vm293_vm2, %v815_v5  ;;  %v816_v10 = vmov (!%p200_p3), 0   ;;  %v817_v11 = vmov (!%p200_p3), 0.0  }
   0x8   : > { %295 = vst.msk [vmem:[#allocation2 + $0x8] sm:$0xff] (!%p200_p3), %vm293_vm2, %v815_v5  ;;  %777 = vset.pattern.permute.xlu1 (!%p200_p3), %v816_v10  ;;  %778 = vset.pattern.permute.xlu0 (!%p200_p3), %v816_v10  ;;  %296 = vst.msk [vmem:[#allocation3] sm:$0xff] (!%p200_p3), %vm293_vm2, %v817_v11 }
   0x9   : > { %299 = vst.msk [vmem:[#allocation4] sm:$0xff] (!%p200_p3), %vm298_vm0, %v817_v11  ;;  %300 = vst.msk [vmem:[#allocation4 + $0x8] sm:$0xff] (!%p200_p3), %vm298_vm0, %v817_v11 }
   0xa   : > { %297 = vst.msk [vmem:[#allocation3 + $0x8] sm:$0xff] (!%p200_p3), %vm293_vm2, %v817_v11 }
   0xe   : > { %s916_s12 = smov (!%p250_p4, %s805_s12), 15  ;;  %v393_v12 = vld [vmem:[#allocation2] sm:$0xff] }
   0xf   : > { %s856_s16 = sshll.u32 %s916_s12, 4  ;;  %v394_v15 = vld [vmem:[#allocation2 + $0x8] sm:$0xff]  ;;  %v426_v37 = vld [vmem:[#allocation3] sm:$0xff] }
  0x10   : > { %s267_s19 = scalar_lea.vmem %s908_s1, %s856_s16  ;;  %s257_s22 = scalar_lea.vmem %s907_s0, %s856_s16  ;;  %v442_v49 = vld [vmem:[#allocation4 + $0x8] sm:$0xff]  ;;  %v441_v51 = vld [vmem:[#allocation4] sm:$0xff] }
  0x11   : > { %v303_v0 = vld [vmem:[%s267_s19] sm:$0xff]  ;;  %v304_v1 = vld [vmem:[%s267_s19 + $0x8] sm:$0xff]  ;;  %s277_s25 = scalar_lea.vmem %s909_s2, %s856_s16  ;;  %v427_v40 = vld [vmem:[#allocation3 + $0x8] sm:$0xff]  ;;  %s287_s28 = scalar_lea.vmem %s910_s3, %s856_s16 }
  0x12   : > { %v301_v2 = vld [vmem:[%s257_s22] sm:$0xff]  ;;  %v740_v3 = vpack.c.bf16 %v304_v1, %v303_v0  ;;  %v302_v4 = vld [vmem:[%s257_s22 + $0x8] sm:$0xff] }
  0x13   : > { %730 = vmatprep.mubr.msk.f32.mxu0 %vm298_vm0, %v301_v2  ;;  %v455_v20 = vld [vmem:[%s277_s25] sm:$0xff]  ;;  %v456_v21 = vld [vmem:[%s277_s25 + $0x8] sm:$0xff] }
  0x14   : > { %742 = vmatprep.subr.msk.bf16.mxu0 %vm741_vm1, %v740_v3  ;;  %v746_v22 = vpack.c.bf16 %v456_v21, %v455_v20 }
  0x15   : > { %745 = vmatpush3.bf16.xpose.msk.msra.mxu0 %vm741_vm1, %v740_v3 }
  0x16   : > { %747 = vmatprep.subr.bf16.mxu1 %v746_v22 }
  0x17   : > { %749 = vmatpush3.bf16.msra.mxu1 %v746_v22 }
  0x1c   : > { %731 = vmatmul.mubr.msk.f32.vlgmr.msra.gmra.mrb[0].mxu0 %vm298_vm0, %v302_v4 }
  0xef   : > { %v732_v6 = vpop.f32.mrb[0].mxu0 }
  0xf0   : > { %v384_v7 = vpop.f32.mrb[1].mxu0  ;;  %v399_v9 = vsel %vm395_vm3, %v732_v6, -inf }
  0xf1   : > { %v396_v8 = vsel %vm395_vm3, %v384_v7, -inf }
  0xf2   : > { %397 = vmax.xlane.f32.xlu0 %v396_v8 }
  0xf6   : > { %400 = vmax.xlane.f32.xlu0 %v399_v9 }
 0x17f   : > { %v398_v13 = vpop.xlane.xlu0 %397 }
 0x180   : > { %v402_v14 = vmax.f32 %v393_v12, %v398_v13 }
 0x182   : > { %v404_v16 = vsub.f32 %v393_v12, %v402_v14  ;;  %542 = vst.msk [vmem:[#allocation2] sm:$0xff] %vm293_vm2, %v402_v14  ;;  %412 = vperm.xlu1 %777, %v402_v14  }
 0x183   : > { %v401_v17 = vpop.xlane.xlu0 %400 }
 0x184   : > { %v403_v18 = vmax.f32 %v394_v15, %v401_v17  ;;  %v406_v34 = vmul.f32 1.442695, %v404_v16 }
 0x186   : > { %v405_v19 = vsub.f32 %v394_v15, %v403_v18  ;;  %543 = vst.msk [vmem:[#allocation2 + $0x8] sm:$0xff] %vm293_vm2, %v403_v18  ;;  %417 = vperm.xlu1 %777, %v403_v18  }
 0x188   : > { %v408_v33 = vmul.f32 1.442695, %v405_v19 }
 0x201   : > { %v413_v23 = vpop.permute.xlu1 %412 }
 0x202   : > { %v420_v24 = vsub.f32 %v384_v7, %v413_v23 }
 0x204   : > { %v422_v25 = vmul.f32 1.442695, %v420_v24 }
 0x205   : > { %v418_v26 = vpop.permute.xlu1 %417 }
 0x206   : > { %779 = vpow2.f32 %v422_v25  ;;  %v421_v27 = vsub.f32 %v732_v6, %v418_v26 }
 0x208   : > { %v424_v28 = vmul.f32 1.442695, %v421_v27 }
 0x20a   : > { %781 = vpow2.f32 %v424_v28 }
 0x20b   : > { %783 = vpow2.f32 %v408_v33 }
 0x20c   : > { %785 = vpow2.f32 %v406_v34 }
 0x210   : > { %v780_v29 = vpop.eup %779 }
 0x211   : > { %737 = vmatprep.mubr.msk.f32.mxu1 %vm395_vm3, %v780_v29  ;;  %v430_v30 = vsel %vm395_vm3, %v780_v29, 0.0 }
 0x212   : > { %431 = vadd.xlane.f32.xlu0 %v430_v30 }
 0x214   : > { %v782_v31 = vpop.eup %781 }
 0x215   : > { %738 = vmatmul.mubr.msk.f32.vlgmr.msra.gmra.mrb[0].mxu1 %vm395_vm3, %v782_v31  ;;  %v433_v32 = vsel %vm395_vm3, %v782_v31, 0.0  ;;  %v784_v35 = vpop.eup %783 }
 0x216   : > { %434 = vadd.xlane.f32.xlu1 %v433_v32  ;;  %v786_v36 = vpop.eup %785  ;;  %v429_v42 = vmul.f32 %v784_v35, %v427_v40 }
 0x217   : > { %v428_v38 = vmul.f32 %v786_v36, %v426_v37 }
 0x227   : > { %450 = vperm.xlu1 %777, %v784_v35  }
 0x228   : > { %445 = vperm.xlu0 %778, %v786_v36  }
 0x29f   : > { %v432_v39 = vpop.xlane.xlu0 %431 }
 0x2a0   : > { %v436_v41 = vadd.f32 %v432_v39, %v428_v38 }
 0x2a2   : > { %439 = vst.msk [vmem:[#allocation3] sm:$0xff] %vm293_vm2, %v436_v41 }
 0x2a3   : > { %v435_v43 = vpop.xlane.xlu1 %434 }
 0x2a4   : > { %v437_v44 = vadd.f32 %v435_v43, %v429_v42 }
 0x2a6   : > { %440 = vst.msk [vmem:[#allocation3 + $0x8] sm:$0xff] %vm293_vm2, %v437_v44 }
 0x2a7   : > { %v451_v50 = vpop.permute.xlu1 %450  ;;  %v446_v52 = vpop.permute.xlu0 %445 }
 0x2a8   : > { %v454_v53 = vmul.f32 %v451_v50, %v442_v49  ;;  %v453_v54 = vmul.f32 %v446_v52, %v441_v51 }
 0x2a9   : > { %v547_v45 = vld [vmem:[#allocation3] sm:$0xff] }
 0x2aa   : > { %787 = vrcp.f32 %v547_v45 }
 0x2ad   : > { %v548_v46 = vld [vmem:[#allocation3 + $0x8] sm:$0xff] }
 0x2ae   : > { %789 = vrcp.f32 %v548_v46 }
 0x2b4   : > { %v788_v47 = vpop.eup %787 }
 0x2b5   : > { %555 = vperm.xlu0 %778, %v788_v47  }
 0x2b8   : > { %v790_v48 = vpop.eup %789 }
 0x2b9   : > { %560 = vperm.xlu0 %778, %v790_v48  }
 0x2e8   : > { %v739_v55 = vpop.f32.mrb[0].mxu1 }
 0x2e9   : > { %v539_v56 = vadd.f32 %v739_v55, %v454_v53  ;;  %v529_v57 = vpop.f32.mrb[1].mxu1 }
 0x2ea   : > { %v538_v58 = vadd.f32 %v529_v57, %v453_v54 }
 0x2eb   : > { %541 = vst.msk [vmem:[#allocation4 + $0x8] sm:$0xff] %vm298_vm0, %v539_v56 }
 0x2ec   : > { %540 = vst.msk [vmem:[#allocation4] sm:$0xff] %vm298_vm0, %v538_v58 }
 0x2f2   : > { %v552_v62 = vld [vmem:[#allocation4 + $0x8] sm:$0xff] }
 0x2f3   : > { %v551_v59 = vld [vmem:[#allocation4] sm:$0xff] }
 0x334   : > { %v556_v60 = vpop.permute.xlu0 %555 }
 0x335   : > { %v563_v61 = vmul.f32 %v556_v60, %v551_v59 }
 0x337   : > { %565 = vst.msk [vmem:[%s287_s28] sm:$0xff] %vm298_vm0, %v563_v61 }
 0x338   : > { %v561_v63 = vpop.permute.xlu0 %560 }
 0x339   : > { %v564_v0 = vmul.f32 %v561_v63, %v552_v62 }
 0x33b   : > { %566 = vst.msk [vmem:[%s287_s28 + $0x8] sm:$0xff] %vm298_vm0, %v564_v0 }
 0x33c PF: > { %s13_s14 = sadd.s32 1, %s813_s14   ;;  %s911_s12 = smov %s809_s13 }
 0x33d   : > { %p10_p5 = scmp.ge.s32.totalorder %s13_s14, 18   ;;  %s912_s13 = smov %s914_s15 }
 0x33f   :  { %12 = sbr.rel (!%p10_p5) target bundleno = 2 (0x2), region = 76 }

// kernel: self_attention.5
= control target key start
LH: loop header
LB: loop body
LE: loop exit
PB: predicated region body
PF: predicated region fallthrough
CT: control target
= control target key end

     0   :  { %vm30_vm0 = vcmask 261120   ;;  %s284_s0 = inlined_call_operand.vmem [shape: f32[32,32], index: 0, kind: input, shape index: {}]   ;;  %s285_s1 = inlined_call_operand.vmem [shape: f32[32,32], index: 1, kind: input, shape index: {}]   ;;  %s286_s2 = inlined_call_operand.vmem [shape: f32[1,32], index: 2, kind: input, shape index: {}]   ;;  %s287_s3 = inlined_call_operand.hbm [shape: f32[32,32], index: 3, kind: output, shape index: {}]  }
   0x1   :  { %v19_v0 = vld [vmem:[%s285_s1] sm:$0xff]  ;;  %v20_v1 = vld [vmem:[%s285_s1 + $0x8] sm:$0xff]  ;;  %v21_v2 = vld [vmem:[%s285_s1 + $0x10] sm:$0xff] }
   0x2   :  { %v175_v3 = vpack.c.bf16 %v20_v1, %v19_v0  ;;  %v22_v4 = vld [vmem:[%s285_s1 + $0x18] sm:$0xff]  ;;  %v15_v5 = vld [vmem:[%s284_s0] sm:$0xff]  ;;  %v17_v6 = vld [vmem:[%s284_s0 + $0x10] sm:$0xff] }
   0x3   :  { %v179_v7 = vpack.c.bf16 %v22_v4, %v21_v2  ;;  %169 = vmatprep.mubr.msk.f32.mxu0 %vm30_vm0, %v15_v5  ;;  %172 = vmatprep.mubr.msk.f32.mxu1 %vm30_vm0, %v17_v6 }
   0x4   :  { %8 = vsyncpa [#allocation3], 0  ;;  %176 = vmatprep.subr.bf16.mxu0 %v175_v3  ;;  %183 = vmatprep.subr.bf16.mxu1 %v175_v3  ;;  %v16_v8 = vld [vmem:[%s284_s0 + $0x8] sm:$0xff]  ;;  %v18_v9 = vld [vmem:[%s284_s0 + $0x18] sm:$0xff]  ;;  %s214_s29 = smov [#allocation2]  }
   0x5   :  { %178 = vmatpush3.bf16.msra.mxu0 %v175_v3  ;;  %185 = vmatpush3.bf16.msra.mxu1 %v175_v3  ;;  %v148_v10 = vld [vmem:[%s286_s2] ss:$0 sm:$0xff]  ;;  %s137_s30 = sshll.u32 %s214_s29, 4  ;;  %s138_s30 = int_to_ptr.vmem [resolvable:$true] %s137_s30 }
   0x6   :  { %180 = vmatprep.subr.bf16.mxu0 %v179_v7  ;;  %184 = vmatprep.subr.bf16.mxu1 %v179_v7  ;;  %s190_s0 = scalar_lea.vmem %s138_s30, 512  ;;  %p195_p1 = scmp.lt.s32.totalorder %s138_s30, %s138_s30 }
   0x7   :  { %p191_p0 = scmp.ne.s32.totalorder %s138_s30, %s190_s0  ;;  %p196_p2 = scmp.lt.s32.totalorder %s190_s0, %s190_s0 }
   0x9   :  { %182 = vmatpush3.bf16.msra.mxu0 %v179_v7  ;;  %186 = vmatpush3.bf16.msra.mxu1 %v179_v7  ;;  %p197_p3 = por %p196_p2, %p195_p1 }
   0xb   :  { %p198_p4 = pnand %p197_p3, %p191_p0 }
   0xc   :  { %170 = vmatmul.mubr.msk.f32.vlgmr.msra.gmra.mrb[0].mxu0 %vm30_vm0, %v16_v8  ;;  %173 = vmatmul.mubr.msk.f32.vlgmr.msra.gmra.mrb[0].mxu1 %vm30_vm0, %v18_v9 }
  0xdf   :  { %v171_v11 = vpop.f32.mrb[0].mxu0  ;;  %v174_v12 = vpop.f32.mrb[0].mxu1 }
  0xe0   :  { %v115_v13 = vadd.f32 %v171_v11, %v148_v10  ;;  %v125_v14 = vadd.f32 %v174_v12, %v148_v10  ;;  %v109_v15 = vpop.f32.mrb[1].mxu0  ;;  %v119_v16 = vpop.f32.mrb[1].mxu1 }
  0xe1   :  { %v110_v17 = vadd.f32 %v148_v10, %v109_v15  ;;  %v120_v18 = vadd.f32 %v148_v10, %v119_v16 }
  0xe2   :  { %129 = vst.msk [vmem:[#allocation2 + $0x8] sm:$0xff] %vm30_vm0, %v115_v13  ;;  %131 = vst.msk [vmem:[#allocation2 + $0x18] sm:$0xff] %vm30_vm0, %v125_v14 }
  0xe3   :  { %128 = vst.msk [vmem:[#allocation2] sm:$0xff] %vm30_vm0, %v110_v17  ;;  %130 = vst.msk [vmem:[#allocation2 + $0x10] sm:$0xff] %vm30_vm0, %v120_v18 }
  0xe4   :  { %201 = shalt.err (!%p198_p4)
}
  0xe5   :  { %s202_s5 = scalar_lea.hbm %s287_s3, 512 }
  0xe6   :  { %p203_p5 = scmp.ne.s32.totalorder %s287_s3, %s202_s5  ;;  %p206_p6 = scmp.lt.u32.totalorder %s202_s5, %s287_s3 }
  0xe8   :  { %p208_p7 = pnand %p206_p6, %p203_p5 }
  0xea   :  { %211 = shalt.err (!%p208_p7)
}
  0xeb   :  { %s215_s10 = smov 128   ;;  %s216_s11 = smov 8  }
  0xec   :  { %143 = dma.vmem_to_hbm [thread:$0]  %s138_s30, 512, %s287_s3, [#allocation3], %s215_s10, %s215_s10, %s216_s11  }
  0xed   :  { %212 = dma.done.wait [#allocation3], 512  }
  0xee   :  { %213 = vsyncadd [#allocation3], 4294966784 }
  0xef   :  { %147 = vsyncpa [#allocation3], 1 }

</bundles_post_ra>
